<compile_context>
chip_gen: v5e
topology: v5e:2x2
jax: 0.10.0
libtpu: 0.0.40
codegen_flags: <defaults>
</compile_context>

<pallas_src>
import functools

import jax
import jax.numpy as jnp
from jax.experimental import pallas as pl
from jax.experimental.pallas import tpu as pltpu

LANE = 128  # padded slab width: [output | hidden | zero pad]


# ---------------------------------------------------------------------------
# In-kernel helpers
# ---------------------------------------------------------------------------
def _masked_log_softmax(pre, output_size):
    """log_softmax over lanes [0, output_size); identity on remaining lanes."""
    lane = jax.lax.broadcasted_iota(jnp.int32, pre.shape, dimension=1)
    mask = lane < output_size
    neg_inf = jnp.float32(-jnp.inf)
    masked = jnp.where(mask, pre, neg_inf)
    m = jnp.max(masked, axis=-1, keepdims=True)
    lse = jnp.log(jnp.sum(jnp.exp(masked - m), axis=-1, keepdims=True))
    return jnp.where(mask, pre - m - lse, pre)


# ---------------------------------------------------------------------------
# Kernels
# ---------------------------------------------------------------------------
def rnn_step_kernel(output_size,
                    x_ref, h_ref, lang_ref, wx_ref, wh_ref, wl_ref, b_ref,
                    out_ref):
    """Single RNN step.

    Weights already contain the (I + w2) fold, so `pre` is directly the packed
    slab [o2 | h_new | 0-pad] in one matmul round (3 independent small dots).
    """
    pre = (jnp.dot(x_ref[...], wx_ref[...], preferred_element_type=jnp.float32)
           + jnp.dot(h_ref[...], wh_ref[...], preferred_element_type=jnp.float32)
           + jnp.dot(lang_ref[...], wl_ref[...], preferred_element_type=jnp.float32)
           + b_ref[...])
    # Dropout(p=0.1): identity in eval mode.
    # TODO(synk): training-mode stochastic dropout (pltpu.prng_random_bits) not wired in.
    out_ref[...] = _masked_log_softmax(pre, output_size).astype(out_ref.dtype)


def rnn_seq_kernel(output_size, seq_len, batch,
                   xl_ref, h0_ref, wxl_ref, whp_ref, b_ref, out_ref):
    """T recurrent steps in ONE kernel invocation (no grid).

    xl_ref  : (T*B, input+n_lang)   flattened inputs (lang broadcast per step)
    h0_ref  : (B, LANE)             initial slab (hidden in cols [O, O+H))
    wxl_ref : (input+n_lang, LANE)  fused+folded input/lang weight
    whp_ref : (LANE, LANE)          hidden-recurrence weight lifted to slab
                                    space (zero rows for logit + pad lanes)
    b_ref   : (1, LANE)             fused+folded bias
    out_ref : (T, B, LANE)          per-step slab [log_softmax(o2) | h | pad]
    """
    # Input projection for ALL timesteps in one big-M matmul (bias folded in);
    # this is off the serial recurrence path.
    u = (jnp.dot(xl_ref[...], wxl_ref[...], preferred_element_type=jnp.float32)
         + b_ref[...])                                    # (T*B, LANE)

    carry = h0_ref[...]                                   # (B, LANE) pre-softmax slab
    wh = whp_ref[...]
    for t in range(seq_len):                              # fully unrolled, static indices
        pre = u[t * batch:(t + 1) * batch, :] + jnp.dot(
            carry, wh, preferred_element_type=jnp.float32)
        # log_softmax is OFF the carry path: only `pre` feeds step t+1
        # (logit/pad lanes multiply exact-zero rows of whp next step).
        out_ref[t, :, :] = _masked_log_softmax(pre, output_size).astype(out_ref.dtype)
        carry = pre


# ---------------------------------------------------------------------------
# Wrappers
# ---------------------------------------------------------------------------
def prepare_params(params, input_size, output_size):
    """One-time algebraic fusion + (I + w2) fold + lane padding to LANE."""
    w_i2h, b_i2h = params["w_i2h"], params["b_i2h"]
    w_i2o, b_i2o = params["w_i2o"], params["b_i2o"]
    w_o2o, b_o2o = params["w_o2o"], params["b_o2o"]
    hidden_size = w_i2h.shape[1]
    n_lang = w_i2h.shape[0] - input_size - hidden_size
    oh = output_size + hidden_size
    assert oh <= LANE

    woo_o = w_o2o[:output_size]          # (output, output) — cat order is (output, hidden)
    woo_h = w_o2o[output_size:]          # (hidden, output)

    w_direct = w_i2o @ woo_o             # i2o folded through o2o
    b_eff = b_o2o + b_i2o @ woo_o

    w1 = jnp.concatenate([w_direct, w_i2h], axis=1)           # (in1, oh)
    b1 = jnp.concatenate([b_eff, b_i2h])                      # (oh,)

    # pre = hz + hz @ w2 = hz @ (I + w2): bake (I + w2) into stage 1.
    a = jnp.eye(oh, dtype=jnp.float32)
    a = a.at[output_size:, :output_size].add(woo_h)
    w1f = w1 @ a                                              # (in1, oh)
    b1f = b1 @ a                                              # (oh,)

    # Lane-pad slab width to LANE: unmasked full-width stores, clean MXU N dim.
    pad = LANE - oh
    w1p = jnp.pad(w1f, ((0, 0), (0, pad)))                    # (in1, LANE)
    b1p = jnp.pad(b1f, (0, pad)).reshape(1, LANE)

    # Row splits matching comb = cat(x, h, lang).
    w1_x = w1p[:input_size]
    w1_h = w1p[input_size:input_size + hidden_size]
    w1_l = w1p[input_size + hidden_size:]

    # Sequence-mode weights: x+lang rows packed; hidden recurrence lifted to
    # padded slab space (zero rows for logit + pad lanes -> no lane slicing of
    # the carried slab).
    w1_xl = jnp.concatenate([w1_x, w1_l], axis=0)             # (input+n_lang, LANE)
    w1_hpad = jnp.zeros((LANE, LANE), jnp.float32)
    w1_hpad = w1_hpad.at[output_size:oh, :].set(w1_h)

    return {
        "w1_x": w1_x, "w1_h": w1_h, "w1_l": w1_l, "b1": b1p,
        "w1_xl": w1_xl, "w1_hpad": w1_hpad,
        "input_size": input_size, "hidden_size": hidden_size,
        "output_size": output_size, "n_lang": n_lang,
    }


def rnn_forward(x, h, lang, fused):
    """Single step matching RNN.forward(input, hidden, lang) -> (log_probs, hidden)."""
    B = x.shape[0]
    O, H = fused["output_size"], fused["hidden_size"]

    vmem = pl.BlockSpec(memory_space=pltpu.VMEM)
    slab = pl.pallas_call(
        functools.partial(rnn_step_kernel, O),
        out_shape=jax.ShapeDtypeStruct((B, LANE), jnp.float32),
        in_specs=[vmem] * 7,
        out_specs=vmem,
    )(x, h, lang, fused["w1_x"], fused["w1_h"], fused["w1_l"], fused["b1"])
    return slab[:, :O], slab[:, O:O + H]


def rnn_forward_seq(x_seq, h0, lang, fused):
    """Run T recurrent steps inside ONE pallas_call (no grid; unrolled in-kernel)."""
    T, B, input_size = x_seq.shape
    O, H, n_lang = fused["output_size"], fused["hidden_size"], fused["n_lang"]

    # One-time per-sequence packing (outside the recurrence hot path).
    xl = jnp.concatenate(
        [x_seq, jnp.broadcast_to(lang[None], (T, B, n_lang))], axis=2
    ).reshape(T * B, input_size + n_lang)
    h0_slab = jnp.zeros((B, LANE), jnp.float32).at[:, O:O + H].set(h0)

    vmem = pl.BlockSpec(memory_space=pltpu.VMEM)
    out = pl.pallas_call(
        functools.partial(rnn_seq_kernel, O, T, B),
        out_shape=jax.ShapeDtypeStruct((T, B, LANE), jnp.float32),
        in_specs=[vmem] * 5,
        out_specs=vmem,
    )(xl, h0_slab, fused["w1_xl"], fused["w1_hpad"], fused["b1"])

    return out[:, :, :O], out[-1, :, O:O + H]


# ---------------------------------------------------------------------------
# Parameter init + pure-JAX reference
# ---------------------------------------------------------------------------
def init_params(key, input_size, hidden_size, n_lang, output_size):
    """Deterministic init matching nn.Linear shapes (stored transposed: (in, out))."""
    ks = jax.random.split(key, 6)
    in1 = input_size + hidden_size + n_lang
    in2 = hidden_size + output_size

    def unif(k, shape, fan_in):
        bound = 1.0 / jnp.sqrt(fan_in)
        return jax.random.uniform(k, shape, jnp.float32, -bound, bound)

    return {
        "w_i2h": unif(ks[0], (in1, hidden_size), in1),
        "b_i2h": unif(ks[1], (hidden_size,), in1),
        "w_i2o": unif(ks[2], (in1, output_size), in1),
        "b_i2o": unif(ks[3], (output_size,), in1),
        "w_o2o": unif(ks[4], (in2, output_size), in2),
        "b_o2o": unif(ks[5], (output_size,), in2),
    }


def reference_step(x, h, lang, params):
    comb = jnp.concatenate([x, h, lang], axis=1)
    h_new = comb @ params["w_i2h"] + params["b_i2h"]
    o1 = comb @ params["w_i2o"] + params["b_i2o"]
    oc = jnp.concatenate([o1, h_new], axis=1)
    o2 = oc @ params["w_o2o"] + params["b_o2o"]
    return jax.nn.log_softmax(o2, axis=1), h_new


if __name__ == "__main__":
    B = 8              # multiple of 8 -> fills f32 sublanes
    T = 8              # sequence length for the in-kernel recurrence
    input_size = 16
    hidden_size = 32
    n_lang = 4
    output_size = 16

    key = jax.random.PRNGKey(0)
    k_x, k_xs, k_l, k_p = jax.random.split(key, 4)
    x = jax.random.normal(k_x, (B, input_size), jnp.float32)
    x_seq = jax.random.normal(k_xs, (T, B, input_size), jnp.float32)
    h0 = jnp.zeros((B, hidden_size), jnp.float32)            # initHidden()
    lang = jax.random.normal(k_l, (B, n_lang), jnp.float32)
    params = init_params(k_p, input_size, hidden_size, n_lang, output_size)
    fused = prepare_params(params, input_size, output_size)

    # ---- single-step forward (matches RNN.forward) ----
    out, hid = rnn_forward(x, h0, lang, fused)
    jax.block_until_ready((out, hid))
    ref_out, ref_hid = reference_step(x, h0, lang, params)
    assert jnp.allclose(out, ref_out, atol=1e-4), "single-step output mismatch"
    assert jnp.allclose(hid, ref_hid, atol=1e-4), "single-step hidden mismatch"

    # ---- sequence forward: recurrence inside ONE kernel invocation ----
    logp_seq, h_final = rnn_forward_seq(x_seq, h0, lang, fused)
    jax.block_until_ready((logp_seq, h_final))

    h = h0
    ref_lps = []
    for t in range(T):
        lp, h = reference_step(x_seq[t], h, lang, params)
        ref_lps.append(lp)
    ref_lps = jnp.stack(ref_lps)
    assert jnp.allclose(logp_seq, ref_lps, atol=1e-3), "sequence output mismatch"
    assert jnp.allclose(h_final, h, atol=1e-3), "sequence hidden mismatch"

    print("KERNEL_OK")
</pallas_src>

<mosaic_0001>
module attributes {stable_mosaic.version = 11 : i64} {
  func.func @rnn_step_kernel(%arg0: memref<8x16xf32, #tpu.memory_space<vmem>>, %arg1: memref<8x32xf32, #tpu.memory_space<vmem>>, %arg2: memref<8x4xf32, #tpu.memory_space<vmem>>, %arg3: memref<16x128xf32, #tpu.memory_space<vmem>>, %arg4: memref<32x128xf32, #tpu.memory_space<vmem>>, %arg5: memref<4x128xf32, #tpu.memory_space<vmem>>, %arg6: memref<1x128xf32, #tpu.memory_space<vmem>>, %arg7: memref<8x128xf32, #tpu.memory_space<vmem>>) attributes {dimension_semantics = [], scalar_prefetch = 0 : i64, scratch_operands = 0 : i64, tpu.core_type = #tpu.core_type<tc>} {
    %c0 = arith.constant 0 : index
    %c0_0 = arith.constant 0 : index
    %0 = vector.load %arg0[%c0, %c0_0] : memref<8x16xf32, #tpu.memory_space<vmem>>, vector<8x16xf32>
    %c0_1 = arith.constant 0 : index
    %c0_2 = arith.constant 0 : index
    %1 = vector.load %arg3[%c0_1, %c0_2] : memref<16x128xf32, #tpu.memory_space<vmem>>, vector<16x128xf32>
    %cst = arith.constant dense<0.000000e+00> : vector<8x128xf32>
    %2 = tpu.matmul %0, %1, %cst {dimension_numbers = #tpu.dot_dimension_numbers<[1], [0], [0], [1], [0, 0, 1, 1], [], []>} : vector<8x16xf32>, vector<16x128xf32>, vector<8x128xf32> -> vector<8x128xf32>
    %c0_3 = arith.constant 0 : index
    %c0_4 = arith.constant 0 : index
    %3 = vector.load %arg1[%c0_3, %c0_4] : memref<8x32xf32, #tpu.memory_space<vmem>>, vector<8x32xf32>
    %c0_5 = arith.constant 0 : index
    %c0_6 = arith.constant 0 : index
    %4 = vector.load %arg4[%c0_5, %c0_6] : memref<32x128xf32, #tpu.memory_space<vmem>>, vector<32x128xf32>
    %cst_7 = arith.constant dense<0.000000e+00> : vector<8x128xf32>
    %5 = tpu.matmul %3, %4, %cst_7 {dimension_numbers = #tpu.dot_dimension_numbers<[1], [0], [0], [1], [0, 0, 1, 1], [], []>} : vector<8x32xf32>, vector<32x128xf32>, vector<8x128xf32> -> vector<8x128xf32>
    %6 = arith.addf %2, %5 : vector<8x128xf32>
    %c0_8 = arith.constant 0 : index
    %c0_9 = arith.constant 0 : index
    %7 = vector.load %arg2[%c0_8, %c0_9] : memref<8x4xf32, #tpu.memory_space<vmem>>, vector<8x4xf32>
    %c0_10 = arith.constant 0 : index
    %c0_11 = arith.constant 0 : index
    %8 = vector.load %arg5[%c0_10, %c0_11] : memref<4x128xf32, #tpu.memory_space<vmem>>, vector<4x128xf32>
    %cst_12 = arith.constant dense<0.000000e+00> : vector<8x128xf32>
    %9 = tpu.matmul %7, %8, %cst_12 {dimension_numbers = #tpu.dot_dimension_numbers<[1], [0], [0], [1], [0, 0, 1, 1], [], []>} : vector<8x4xf32>, vector<4x128xf32>, vector<8x128xf32> -> vector<8x128xf32>
    %10 = arith.addf %6, %9 : vector<8x128xf32>
    %c0_13 = arith.constant 0 : index
    %c0_14 = arith.constant 0 : index
    %11 = vector.load %arg6[%c0_13, %c0_14] : memref<1x128xf32, #tpu.memory_space<vmem>>, vector<1x128xf32>
    %12 = vector.broadcast %11 : vector<1x128xf32> to vector<8x128xf32>
    %13 = arith.addf %10, %12 : vector<8x128xf32>
    %14 = tpu.iota {dimensions = array<i32: 1>} : vector<8x128xi32>
    %c16_i32 = arith.constant 16 : i32
    %15 = vector.broadcast %c16_i32 : i32 to vector<8x128xi32>
    %16 = arith.cmpi slt, %14, %15 : vector<8x128xi32>
    %cst_15 = arith.constant 0xFF800000 : f32
    %17 = vector.broadcast %cst_15 : f32 to vector<8x128xf32>
    %18 = arith.select %16, %13, %17 : vector<8x128xi1>, vector<8x128xf32>
    %cst_16 = arith.constant dense<0xFF800000> : vector<8xf32>
    %19 = vector.multi_reduction <maximumf>, %18, %cst_16 [1] : vector<8x128xf32> to vector<8xf32>
    %20 = vector.shape_cast %19 : vector<8xf32> to vector<8x1xf32>
    %21 = vector.broadcast %20 : vector<8x1xf32> to vector<8x128xf32>
    %22 = arith.subf %18, %21 : vector<8x128xf32>
    %23 = math.exp %22 : vector<8x128xf32>
    %cst_17 = arith.constant dense<0.000000e+00> : vector<8xf32>
    %24 = vector.multi_reduction <add>, %23, %cst_17 [1] : vector<8x128xf32> to vector<8xf32>
    %25 = vector.shape_cast %24 : vector<8xf32> to vector<8x1xf32>
    %26 = math.log %25 : vector<8x1xf32>
    %27 = vector.broadcast %20 : vector<8x1xf32> to vector<8x128xf32>
    %28 = arith.subf %13, %27 : vector<8x128xf32>
    %29 = vector.broadcast %26 : vector<8x1xf32> to vector<8x128xf32>
    %30 = arith.subf %28, %29 : vector<8x128xf32>
    %31 = arith.select %16, %30, %13 : vector<8x128xi1>, vector<8x128xf32>
    %c0_18 = arith.constant 0 : index
    %c0_19 = arith.constant 0 : index
    %32 = vector.load %arg7[%c0_18, %c0_19] : memref<8x128xf32, #tpu.memory_space<vmem>>, vector<8x128xf32>
    tpu.vector_store %arg7[%c0_18, %c0_19], %31 {strides = array<i32>} : memref<8x128xf32, #tpu.memory_space<vmem>>, vector<8x128xf32>,
    return
  }
}

</mosaic_0001>

<bundles_post_ra>
// kernel: tpu_custom_call.1
= control target key start
LH: loop header
LB: loop body
LE: loop exit
PB: predicated region body
PF: predicated region fallthrough
CT: control target
= control target key end

     0   :  { %12 = vsyncpa [#allocation3], 0  ;;  %s388_s0 = inlined_call_operand.vmem [shape: f32[8,16], index: 0, kind: input, shape index: {}]   ;;  %s389_s1 = inlined_call_operand.hbm [shape: f32[8,32], index: 1, kind: input, shape index: {}]   ;;  %s390_s2 = inlined_call_operand.vmem [shape: f32[8,4], index: 2, kind: input, shape index: {}]   ;;  %s391_s3 = inlined_call_operand.hbm [shape: f32[16,128], index: 3, kind: input, shape index: {}]   ;;  %s392_s4 = inlined_call_operand.hbm [shape: f32[32,128], index: 4, kind: input, shape index: {}]   ;;  %s393_s5 = inlined_call_operand.vmem [shape: f32[4,128], index: 5, kind: input, shape index: {}]   ;;  %s394_s6 = inlined_call_operand.vmem [shape: f32[1,128], index: 6, kind: input, shape index: {}]   ;;  %s395_s7 = inlined_call_operand.hbm [shape: f32[8,128], index: 7, kind: output, shape index: {}]  }
   0x1   :  { %13 = vsyncpa [#allocation6], 0  ;;  %s34_s26 = sshll.u32 %s391_s3, 4  ;;  %s35_s26 = int_to_ptr.hbm [resolvable:$true] %s34_s26 }
   0x2   :  { %14 = vsyncpa [#allocation4], 0  ;;  %s316_s27 = smov [#allocation5]   ;;  %s22_s8 = sshll.u32 %s389_s1, 4  ;;  %s23_s8 = int_to_ptr.hbm [resolvable:$true] %s22_s8 }
   0x3   :  { %s36_s28 = sshll.u32 %s316_s27, 4  ;;  %s317_s9 = smov 128   ;;  %s37_s28 = int_to_ptr.vmem [resolvable:$true] %s36_s28 }
   0x4   :  { %s318_s10 = smov 8   ;;  %s319_s11 = smov [#allocation2]  }
   0x5   :  { %42 = dma.hbm_to_vmem [thread:$0]  %s35_s26, 256, %s37_s28, [#allocation6], %s317_s9, %s317_s9, %s318_s10  }
   0x6   :  { %s24_s12 = sshll.u32 %s319_s11, 4  ;;  %s47_s15 = sshll.u32 %s392_s4, 4  ;;  %s25_s12 = int_to_ptr.vmem [resolvable:$true] %s24_s12  ;;  %s48_s15 = int_to_ptr.hbm [resolvable:$true] %s47_s15 }
   0x7   :  { %27 = dma.hbm_to_vmem [thread:$0]  %s23_s8, 128, %s25_s12, [#allocation3]  }
   0x8   :  { %s320_s3 = smov [#allocation7]  }
   0x9   :  { %s49_s16 = sshll.u32 %s320_s3, 4  ;;  %s50_s16 = int_to_ptr.vmem [resolvable:$true] %s49_s16 }
   0xa   :  { %55 = dma.hbm_to_vmem [thread:$0]  %s48_s15, 512, %s50_s16, [#allocation6], %s317_s9, %s317_s9, %s318_s10  }
   0xb   :  { %310 = dma.done.wait [#allocation3], 128  }
   0xc   :  { %311 = vsyncadd [#allocation3], 4294967168 }
   0xd   :  { %312 = dma.done.wait [#allocation6], 768  }
   0xe   :  { %313 = vsyncadd [#allocation6], 4294966528  ;;  %vm134_vm0 = vcmask 1043456   ;;  %vm130_vm1 = vcmask 31744   ;;  %v79_v0 = vld [vmem:[#allocation7 + $0x18] sm:$0xff]  ;;  %v78_v1 = vld [vmem:[#allocation7 + $0x10] sm:$0xff]  ;;  %v164_v10 = vlaneseq }
   0xf   :  { %v129_v2 = vld [vmem:[%s393_s5] sm:$0xf]  ;;  %96 = vmatpush.msra.mxu0 %v79_v0  ;;  %v74_v4 = vld [vmem:[#allocation5 + $0x8] sm:$0xff]  ;;  %v73_v6 = vld [vmem:[#allocation5] sm:$0xff]  ;;  %vm104_vm2 = vcmask 130048   ;;  %vm80_vm3 = vcmask 261120  }
  0x10   :  { %201 = vmatpush.msk.msra.mxu2 %vm134_vm0, %v129_v2  ;;  %v128_v3 = vld [vmem:[%s390_s2] sm:$0xff]  ;;  %122 = vmatpush.msra.mxu1 %v74_v4  ;;  %v76_v8 = vld [vmem:[#allocation7] sm:$0xff]  ;;  %v165_v14 = vand.u32 127, %v164_v10  ;;  %s188_s23 = sshll.u32 %s395_s7, 4  ;;  %s189_s23 = int_to_ptr.hbm [resolvable:$true] %s188_s23 }
  0x11   :  { %202 = vmatmul.msk.f32.vlgmr.msra.gmra.mxu2 %vm130_vm1, %v128_v3  ;;  %v77_v5 = vld [vmem:[#allocation7 + $0x8] sm:$0xff]  ;;  %97 = vmatpush.msra.mxu0 %v78_v1 }
  0x12   :  { %v72_v7 = vld [vmem:[%s388_s0] sm:$0xff]  ;;  %123 = vmatpush.msra.mxu1 %v73_v6  ;;  %vm166_vm4 = vcmp.lt.s32.totalorder %v165_v14, 16  ;;  %s321_s0 = smov [#allocation8]  }
  0x13   :  { %98 = vmatpush.msra.mxu0 %v77_v5  ;;  %v75_v9 = vld [vmem:[#allocation2] sm:$0xff]  ;;  %200 = vmatmul.msk.f32.vlgmr.msra.gmra.mxu1 %vm104_vm2, %v72_v7  ;;  %s186_s21 = sshll.u32 %s321_s0, 4  ;;  %s187_s21 = int_to_ptr.vmem [resolvable:$true] %s186_s21 }
  0x14   :  { %v209_v16 = vld [vmem:[%s394_s6] ss:$0 sm:$0xff] }
  0x15   :  { %99 = vmatpush.msra.mxu0 %v76_v8 }
  0x16   :  { %199 = vmatmul.msk.f32.vlgmr.msra.gmra.mxu0 %vm80_vm3, %v75_v9 }
  0x90   :  { %v125_v11 = vpop.f32.mrf.mxu1 }
  0x93   :  { %v101_v12 = vpop.f32.mrf.mxu0 }
  0x94   :  { %v155_v13 = vpop.f32.mrf.mxu2  ;;  %v126_v15 = vadd.f32 %v125_v11, %v101_v12 }
  0x96   :  { %v158_v17 = vadd.f32 %v155_v13, %v126_v15 }
  0x98   :  { %v163_v18 = vadd.f32 %v209_v16, %v158_v17 }
  0x9a   :  { %v167_v19 = vsel %vm166_vm4, %v163_v18, -inf }
  0x9b   :  { %168 = vmax.xlane.f32.xlu0 %v167_v19 }
 0x10e   :  { %v169_v20 = vpop.xlane.xlu0 %168 }
 0x10f   :  { %v170_v21 = vsub.f32 %v167_v19, %v169_v20  ;;  %v177_v26 = vsub.f32 %v163_v18, %v169_v20 }
 0x111   :  { %v171_v22 = vmul.f32 1.442695, %v170_v21 }
 0x113   :  { %210 = vpow2.f32 %v171_v22 }
 0x119   :  { %v211_v23 = vpop.eup %210 }
 0x11a   :  { %173 = vadd.xlane.f32.xlu0 %v211_v23 }
 0x18d   :  { %v174_v24 = vpop.xlane.xlu0 %173 }
 0x18e   :  { %212 = vlog2.f32 %v174_v24 }
 0x194   :  { %v213_v25 = vpop.eup %212 }
 0x195   :  { %v176_v27 = vmul.f32 0.6931472, %v213_v25 }
 0x197   :  { %v178_v28 = vsub.f32 %v177_v26, %v176_v27 }
 0x199   :  { %v179_v29 = vsel %vm166_vm4, %v178_v28, %v163_v18 }
 0x19a   :  { %180 = vst [vmem:[#allocation8] sm:$0xff] %v179_v29 }
 0x19b   :  { %191 = dma.vmem_to_hbm [thread:$0]  %s187_s21, 128, %s189_s23, [#allocation4]  }
 0x19c   :  { %314 = dma.done.wait [#allocation4], 128  }
 0x19d   :  { %315 = vsyncadd [#allocation4], 4294967168 }
 0x19e   :  { %196 = vsyncpa [#allocation3], 1 }
 0x19f   :  { %197 = vsyncpa [#allocation6], 1 }
 0x1a0   :  { %198 = vsyncpa [#allocation4], 1 }

</bundles_post_ra>
